<compile_context>
chip_gen: v6e
topology: v6e:2x2x1
jax: 0.10.0
libtpu: 0.0.40
codegen_flags: <defaults>
</compile_context>

<pallas_src>
import jax
import jax.numpy as jnp
from jax.experimental import pallas as pl
from jax.experimental.pallas import tpu as pltpu


def _round_up(x, m):
    return ((x + m - 1) // m) * m


def gcn_agg_kernel(adj_ref, s_ref, o_ref, acc_ref):
    """One (row-tile, k-tile) step of out = relu(adj @ support)."""
    k = pl.program_id(1)

    @pl.when(k == 0)
    def _():
        acc_ref[...] = jnp.zeros_like(acc_ref)

    acc_ref[...] += jnp.dot(
        adj_ref[...], s_ref[...], preferred_element_type=jnp.float32
    )

    @pl.when(k == pl.num_programs(1) - 1)
    def _():
        # Single epilogue: relu + cast + full-lane store (once per row tile).
        o_ref[...] = jnp.maximum(acc_ref[...], 0.0).astype(o_ref.dtype)


def gcn_forward(x, weight, adj, *, tile=512, compute_dtype=jnp.bfloat16):
    """x: [N, F_in], weight: [F_in, F_out], adj: [N, N] -> relu(adj @ (x @ W))."""
    N, F_in = x.shape
    F_out = weight.shape[1]
    out_dtype = x.dtype

    # TODO(synk): dropout is identity in eval mode (self.training=False); training-mode
    # dropout would need pltpu.prng_seed + pltpu.prng_random_bits inside the kernel.

    # Hoisted small GEMM: support = x @ W  (f32, then quantized to bf16 for the kernel).
    support = jnp.dot(x, weight, preferred_element_type=jnp.float32)

    # Tile sizes: multiples of 128, capped at `tile`, re-derived from N so small graphs
    # don't over-pad and large graphs get big pipelined blocks (VMEM footprint stays
    # far below the 64 MiB v7x budget: bf16 adj tile 512x512 = 512 KiB x2 buffers).
    tm = min(tile, _round_up(N, 128))
    tk = tm
    Np = _round_up(N, tm)
    F_pad = _round_up(max(F_out, 128), 128)   # lane-dense output (full vregs)

    cdt = jnp.dtype(compute_dtype)
    adj_p = jnp.pad(adj.astype(compute_dtype), ((0, Np - N), (0, Np - N)))
    sup_p = jnp.pad(support.astype(compute_dtype),
                    ((0, Np - N), (0, F_pad - F_out)))

    grid = (Np // tm, Np // tk)

    cost = pl.CostEstimate(
        flops=2 * Np * Np * F_pad,
        transcendentals=0,
        bytes_accessed=(Np * Np * cdt.itemsize            # adj
                        + Np * F_pad * cdt.itemsize       # support
                        + Np * F_pad * jnp.dtype(out_dtype).itemsize),  # out
    )

    out_p = pl.pallas_call(
        gcn_agg_kernel,
        out_shape=jax.ShapeDtypeStruct((Np, F_pad), out_dtype),
        grid_spec=pltpu.PrefetchScalarGridSpec(
            num_scalar_prefetch=0,
            grid=grid,
            in_specs=[
                pl.BlockSpec((tm, tk), lambda i, k: (i, k)),      # adj tile
                pl.BlockSpec((tk, F_pad), lambda i, k: (k, 0)),   # support tile
            ],
            out_specs=pl.BlockSpec((tm, F_pad), lambda i, k: (i, 0)),
            scratch_shapes=[pltpu.VMEM((tm, F_pad), jnp.float32)],
        ),
        compiler_params=pltpu.CompilerParams(
            dimension_semantics=("parallel", "arbitrary"),
        ),
        cost_estimate=cost,
    )(adj_p, sup_p)

    return out_p[:N, :F_out]


if __name__ == "__main__":
    # Small, tile-friendly shapes.
    N = 128          # number of graph nodes
    F_in = 64        # in_features
    F_out = 32       # out_features

    key = jax.random.PRNGKey(0)
    kx, kw, ka = jax.random.split(key, 3)

    # Node features
    x = jax.random.normal(kx, (N, F_in), dtype=jnp.float32)

    # Xavier-normal weight init (matches torch.nn.init.xavier_normal_):
    # std = sqrt(2 / (fan_in + fan_out))
    std = (2.0 / (F_in + F_out)) ** 0.5
    weight = std * jax.random.normal(kw, (F_in, F_out), dtype=jnp.float32)

    # Symmetric, row-normalized adjacency (dense, deterministic)
    a = jax.random.uniform(ka, (N, N), dtype=jnp.float32)
    adj = (a + a.T) * 0.5
    adj = adj / jnp.sum(adj, axis=1, keepdims=True)

    out = gcn_forward(x, weight, adj)
    out = jax.block_until_ready(out)

    # Reference check in plain JAX (f32). Kernel uses bf16 inputs + f32 accumulate,
    # so allow bf16-level tolerance.
    ref = jnp.maximum(adj @ (x @ weight), 0.0)
    assert out.shape == (N, F_out)
    assert jnp.allclose(out, ref, atol=1e-2, rtol=1e-2), "mismatch vs reference"

    print("KERNEL_OK")
</pallas_src>

<mosaic_0001>
module attributes {stable_mosaic.version = 11 : i64} {
  func.func @gcn_agg_kernel(%arg0: i32, %arg1: i32, %arg2: memref<128x128xbf16, #tpu.memory_space<vmem>>, %arg3: memref<128x128xbf16, #tpu.memory_space<vmem>>, %arg4: memref<128x128xf32, #tpu.memory_space<vmem>>, %arg5: memref<128x128xf32, #tpu.memory_space<vmem>>) attributes {dimension_semantics = [#tpu.dimension_semantics<parallel>, #tpu.dimension_semantics<arbitrary>], iteration_bounds = array<i64: 1, 1>, scalar_prefetch = 0 : i64, scratch_operands = 1 : i64, tpu.core_type = #tpu.core_type<tc>, window_params = [{transform_indices = @transform_0, window_bounds = array<i64: 128, 128>}, {transform_indices = @transform_1, window_bounds = array<i64: 128, 128>}, {transform_indices = @transform_2, window_bounds = array<i64: 128, 128>}]} {
    %c0_i32 = arith.constant 0 : i32
    %0 = arith.cmpi eq, %arg1, %c0_i32 : i32
    %1 = arith.extui %0 : i1 to i32
    %c0_i32_0 = arith.constant 0 : i32
    %2 = arith.cmpi ne, %1, %c0_i32_0 : i32
    scf.if %2 {
      %cst_10 = arith.constant 0.000000e+00 : f32
      %12 = vector.broadcast %cst_10 : f32 to vector<128x128xf32>
      %c0_11 = arith.constant 0 : index
      %c0_12 = arith.constant 0 : index
      %13 = vector.load %arg5[%c0_11, %c0_12] : memref<128x128xf32, #tpu.memory_space<vmem>>, vector<128x128xf32>
      tpu.vector_store %arg5[%c0_11, %c0_12], %12 {strides = array<i32>} : memref<128x128xf32, #tpu.memory_space<vmem>>, vector<128x128xf32>,
    } else {
    }
    %c0 = arith.constant 0 : index
    %c0_1 = arith.constant 0 : index
    %3 = vector.load %arg5[%c0, %c0_1] : memref<128x128xf32, #tpu.memory_space<vmem>>, vector<128x128xf32>
    %c0_2 = arith.constant 0 : index
    %c0_3 = arith.constant 0 : index
    %4 = vector.load %arg2[%c0_2, %c0_3] : memref<128x128xbf16, #tpu.memory_space<vmem>>, vector<128x128xbf16>
    %c0_4 = arith.constant 0 : index
    %c0_5 = arith.constant 0 : index
    %5 = vector.load %arg3[%c0_4, %c0_5] : memref<128x128xbf16, #tpu.memory_space<vmem>>, vector<128x128xbf16>
    %cst = arith.constant dense<0.000000e+00> : vector<128x128xf32>
    %6 = tpu.matmul %4, %5, %cst {dimension_numbers = #tpu.dot_dimension_numbers<[1], [0], [0], [1], [0, 0, 1, 1], [], []>} : vector<128x128xbf16>, vector<128x128xbf16>, vector<128x128xf32> -> vector<128x128xf32>
    %7 = arith.addf %3, %6 : vector<128x128xf32>
    %c0_6 = arith.constant 0 : index
    %c0_7 = arith.constant 0 : index
    %8 = vector.load %arg5[%c0_6, %c0_7] : memref<128x128xf32, #tpu.memory_space<vmem>>, vector<128x128xf32>
    tpu.vector_store %arg5[%c0_6, %c0_7], %7 {strides = array<i32>} : memref<128x128xf32, #tpu.memory_space<vmem>>, vector<128x128xf32>,
    %c0_i32_8 = arith.constant 0 : i32
    %9 = arith.cmpi eq, %arg1, %c0_i32_8 : i32
    %10 = arith.extui %9 : i1 to i32
    %c0_i32_9 = arith.constant 0 : i32
    %11 = arith.cmpi ne, %10, %c0_i32_9 : i32
    scf.if %11 {
      %c0_10 = arith.constant 0 : index
      %c0_11 = arith.constant 0 : index
      %12 = vector.load %arg5[%c0_10, %c0_11] : memref<128x128xf32, #tpu.memory_space<vmem>>, vector<128x128xf32>
      %cst_12 = arith.constant 0.000000e+00 : f32
      %13 = vector.broadcast %cst_12 : f32 to vector<128x128xf32>
      %14 = arith.maximumf %12, %13 : vector<128x128xf32>
      %c0_13 = arith.constant 0 : index
      %c0_14 = arith.constant 0 : index
      %15 = vector.load %arg4[%c0_13, %c0_14] : memref<128x128xf32, #tpu.memory_space<vmem>>, vector<128x128xf32>
      tpu.vector_store %arg4[%c0_13, %c0_14], %14 {strides = array<i32>} : memref<128x128xf32, #tpu.memory_space<vmem>>, vector<128x128xf32>,
    } else {
    }
    return
  }
  func.func @transform_0(%arg0: i32, %arg1: i32) -> (i32, i32) {
    %c0_i32 = arith.constant 0 : i32
    return %arg0, %arg1 : i32, i32
  }
  func.func @transform_1(%arg0: i32, %arg1: i32) -> (i32, i32) {
    %c0_i32 = arith.constant 0 : i32
    %c0_i32_0 = arith.constant 0 : i32
    return %arg1, %c0_i32 : i32, i32
  }
  func.func @transform_2(%arg0: i32, %arg1: i32) -> (i32, i32) {
    %c0_i32 = arith.constant 0 : i32
    %c0_i32_0 = arith.constant 0 : i32
    return %arg0, %c0_i32 : i32, i32
  }
}

</mosaic_0001>

<bundles_post_ra>
// kernel: tpu_custom_call.1
= control target key start
LH: loop header
LB: loop body
LE: loop exit
PB: predicated region body
PF: predicated region fallthrough
CT: control target
= control target key end

     0   :  { %7 = vsyncpa [#allocation4], 0  ;;  %s603_s0 = inlined_call_operand.hbm [shape: bf16[128,128], index: 0, kind: input, shape index: {}]   ;;  %s604_s1 = inlined_call_operand.hbm [shape: bf16[128,128], index: 1, kind: input, shape index: {}]   ;;  %s605_s2 = inlined_call_operand.hbm [shape: f32[128,128], index: 2, kind: output, shape index: {}]  }
   0x1   :  { %8 = vsyncpa [#allocation7], 0 }
   0x2   :  { %9 = vsyncpa [#allocation5], 0  ;;  %s572_s9 = smov [#allocation3]  }
   0x3   :  { %s15_s10 = sshll.u32 %s572_s9, 4  ;;  %s16_s10 = int_to_ptr.vmem [resolvable:$true] %s15_s10 }
   0x4   :  { %s514_s11 = scalar_lea.vmem %s16_s10, 1024  ;;  %p519_p1 = scmp.lt.s32.totalorder %s16_s10, %s16_s10 }
   0x5   :  { %p515_p0 = scmp.ne.s32.totalorder %s16_s10, %s514_s11  ;;  %p520_p2 = scmp.lt.s32.totalorder %s514_s11, %s514_s11 }
   0x7   :  { %p521_p3 = por %p520_p2, %p519_p1 }
   0x9   :  { %p522_p4 = pnand %p521_p3, %p515_p0 }
   0xb   :  { %525 = shalt.err (!%p522_p4)
}
   0xc   :  { %s573_s12 = smov 64   ;;  %s574_s13 = smov 4  }
   0xd   :  { %21 = dma.hbm_to_vmem [thread:$0]  %s603_s0, 1024, %s16_s10, [#allocation4], %s573_s12, %s573_s12, %s574_s13  }
   0xe   :  { %s575_s16 = smov [#allocation6]  }
   0xf   :  { %s27_s17 = sshll.u32 %s575_s16, 4  ;;  %s28_s17 = int_to_ptr.vmem [resolvable:$true] %s27_s17 }
  0x10   :  { %s534_s18 = scalar_lea.vmem %s28_s17, 1024  ;;  %p539_p6 = scmp.lt.s32.totalorder %s28_s17, %s28_s17 }
  0x11   :  { %p535_p5 = scmp.ne.s32.totalorder %s28_s17, %s534_s18  ;;  %p540_p7 = scmp.lt.s32.totalorder %s534_s18, %s534_s18 }
  0x13   :  { %p541_p8 = por %p540_p7, %p539_p6 }
  0x15   :  { %p542_p9 = pnand %p541_p8, %p535_p5 }
  0x17   :  { %545 = shalt.err (!%p542_p9)
}
  0x18   :  { %33 = dma.hbm_to_vmem [thread:$0]  %s604_s1, 1024, %s28_s17, [#allocation7], %s573_s12, %s573_s12, %s574_s13  }
  0x19   :  { %566 = dma.done.wait [#allocation4], 1024  }
  0x1a   :  { %567 = vsyncadd [#allocation4], 4294966272 }
  0x1b   :  { %568 = dma.done.wait [#allocation7], 1024  }
  0x1c   :  { %569 = vsyncadd [#allocation7], 4294966272  ;;  %v490_v0 = vld [vmem:[#allocation6 + $0x38] sm:$0xff]   ;;  %v491_v1 = vld [vmem:[#allocation6 + $0x30] sm:$0xff]   ;;  %s576_s0 = smov [#allocation8]  }
  0x1d   :  { %435 = vmatprep.subr.bf16.mxu0 %v490_v0  ;;  %467 = vmatprep.subr.bf16.mxu1 %v490_v0  ;;  %v492_v2 = vld [vmem:[#allocation6 + $0x28] sm:$0xff]   ;;  %v493_v3 = vld [vmem:[#allocation6 + $0x20] sm:$0xff]   ;;  %v494_v6 = vld [vmem:[#allocation6 + $0x18] sm:$0xff]   ;;  %s390_s1 = sshll.u32 %s576_s0, 4  ;;  %s391_s1 = int_to_ptr.vmem [resolvable:$true] %s390_s1 }
  0x1e   :  { %436 = vmatpush3.bf16.msra.mxu0 %v490_v0  ;;  %475 = vmatpush3.bf16.msra.mxu1 %v490_v0  ;;  %v498_v4 = vld [vmem:[#allocation3] sm:$0xff]   ;;  %v495_v7 = vld [vmem:[#allocation6 + $0x10] sm:$0xff]   ;;  %v496_v8 = vld [vmem:[#allocation6 + $0x8] sm:$0xff]   ;;  %s546_s21 = scalar_lea.vmem %s391_s1, 2048  ;;  %p551_p11 = scmp.lt.s32.totalorder %s391_s1, %s391_s1 }
  0x1f   :  { %437 = vmatprep.subr.bf16.mxu0 %v491_v1  ;;  %468 = vmatprep.subr.bf16.mxu1 %v491_v1  ;;  %v499_v5 = vld [vmem:[#allocation3 + $0x20] sm:$0xff]   ;;  %v500_v10 = vld [vmem:[#allocation3 + $0x8] sm:$0xff]   ;;  %v502_v12 = vld [vmem:[#allocation3 + $0x10] sm:$0xff]   ;;  %p547_p10 = scmp.ne.s32.totalorder %s391_s1, %s546_s21  ;;  %p552_p12 = scmp.lt.s32.totalorder %s546_s21, %s546_s21 }
  0x20   :  { %451 = vmatprep.mubr.bf16.mxu0 %v498_v4  ;;  %459 = vmatprep.mubr.bf16.mxu1 %v499_v5  ;;  %v497_v9 = vld [vmem:[#allocation6] sm:$0xff]   ;;  %v501_v11 = vld [vmem:[#allocation3 + $0x28] sm:$0xff]   ;;  %v503_v13 = vld [vmem:[#allocation3 + $0x30] sm:$0xff]  }
  0x21   :  { %v504_v14 = vld [vmem:[#allocation3 + $0x18] sm:$0xff]   ;;  %p553_p13 = por %p552_p12, %p551_p11 }
  0x22   :  { %438 = vmatpush3.bf16.msra.mxu0 %v491_v1  ;;  %476 = vmatpush3.bf16.msra.mxu1 %v491_v1  ;;  %v505_v15 = vld [vmem:[#allocation3 + $0x38] sm:$0xff]  }
  0x23   :  { %439 = vmatprep.subr.bf16.mxu0 %v492_v2  ;;  %469 = vmatprep.subr.bf16.mxu1 %v492_v2  ;;  %p554_p0 = pnand %p553_p13, %p547_p10 }
  0x26   :  { %440 = vmatpush3.bf16.msra.mxu0 %v492_v2  ;;  %477 = vmatpush3.bf16.msra.mxu1 %v492_v2 }
  0x27   :  { %441 = vmatprep.subr.bf16.mxu0 %v493_v3  ;;  %470 = vmatprep.subr.bf16.mxu1 %v493_v3 }
  0x2a   :  { %442 = vmatpush3.bf16.msra.mxu0 %v493_v3  ;;  %478 = vmatpush3.bf16.msra.mxu1 %v493_v3 }
  0x2b   :  { %443 = vmatprep.subr.bf16.mxu0 %v494_v6  ;;  %471 = vmatprep.subr.bf16.mxu1 %v494_v6 }
  0x2e   :  { %444 = vmatpush3.bf16.msra.mxu0 %v494_v6  ;;  %479 = vmatpush3.bf16.msra.mxu1 %v494_v6 }
  0x2f   :  { %445 = vmatprep.subr.bf16.mxu0 %v495_v7  ;;  %472 = vmatprep.subr.bf16.mxu1 %v495_v7 }
  0x32   :  { %446 = vmatpush3.bf16.msra.mxu0 %v495_v7  ;;  %480 = vmatpush3.bf16.msra.mxu1 %v495_v7 }
  0x33   :  { %447 = vmatprep.subr.bf16.mxu0 %v496_v8  ;;  %473 = vmatprep.subr.bf16.mxu1 %v496_v8 }
  0x36   :  { %448 = vmatpush3.bf16.msra.mxu0 %v496_v8  ;;  %481 = vmatpush3.bf16.msra.mxu1 %v496_v8 }
  0x37   :  { %449 = vmatprep.subr.bf16.mxu0 %v497_v9  ;;  %474 = vmatprep.subr.bf16.mxu1 %v497_v9 }
  0x3a   :  { %450 = vmatpush3.bf16.msra.mxu0 %v497_v9  ;;  %482 = vmatpush3.bf16.msra.mxu1 %v497_v9 }
  0x3d   :  { %452 = vmatmul.mubr.bf16.vlgmr.msra.gmra.mxu0 %v500_v10  ;;  %460 = vmatmul.mubr.bf16.vlgmr.msra.gmra.mxu1 %v501_v11 }
  0x3e   :  { %455 = vmatprep.mubr.bf16.mxu0 %v502_v12  ;;  %463 = vmatprep.mubr.bf16.mxu1 %v503_v13 }
  0x45   :  { %456 = vmatmul.mubr.bf16.gmra.mxu0 %v504_v14  ;;  %464 = vmatmul.mubr.bf16.gmra.mxu1 %v505_v15 }
  0xfd   :  { %v453_v16 = vpop.f32.mrf.mxu0  ;;  %v461_v17 = vpop.f32.mrf.mxu1 }
  0xfe   :  { %v355_v18 = vmax.f32 %v453_v16, 0.0  ;;  %v363_v19 = vmax.f32 %v461_v17, 0.0 }
  0xff   :  { %v239_v20 = vpop.f32.mrf.mxu0  ;;  %v271_v21 = vpop.f32.mrf.mxu1 }
 0x100   :  { %371 = vst [vmem:[#allocation8 + $0x10] sm:$0xff] %v355_v18  ;;  %379 = vst [vmem:[#allocation8 + $0x50] sm:$0xff] %v363_v19  ;;  %v353_v22 = vmax.f32 %v239_v20, 0.0  ;;  %v361_v23 = vmax.f32 %v271_v21, 0.0 }
 0x101   :  { %v454_v24 = vpop.f32.mrf.mxu0  ;;  %v462_v25 = vpop.f32.mrf.mxu1 }
 0x102   :  { %369 = vst [vmem:[#allocation8] sm:$0xff] %v353_v22  ;;  %377 = vst [vmem:[#allocation8 + $0x40] sm:$0xff] %v361_v23  ;;  %v356_v26 = vmax.f32 %v454_v24, 0.0  ;;  %v364_v27 = vmax.f32 %v462_v25, 0.0 }
 0x103   :  { %v242_v28 = vpop.f32.mrf.mxu0  ;;  %v274_v29 = vpop.f32.mrf.mxu1 }
 0x104   :  { %372 = vst [vmem:[#allocation8 + $0x18] sm:$0xff] %v356_v26  ;;  %380 = vst [vmem:[#allocation8 + $0x58] sm:$0xff] %v364_v27  ;;  %v354_v30 = vmax.f32 %v242_v28, 0.0  ;;  %v362_v31 = vmax.f32 %v274_v29, 0.0 }
 0x105   :  { %v457_v32 = vpop.f32.mrf.mxu0  ;;  %v465_v33 = vpop.f32.mrf.mxu1 }
 0x106   :  { %370 = vst [vmem:[#allocation8 + $0x8] sm:$0xff] %v354_v30  ;;  %378 = vst [vmem:[#allocation8 + $0x48] sm:$0xff] %v362_v31  ;;  %v359_v34 = vmax.f32 %v457_v32, 0.0  ;;  %v367_v35 = vmax.f32 %v465_v33, 0.0 }
 0x107   :  { %v255_v36 = vpop.f32.mrf.mxu0  ;;  %v287_v37 = vpop.f32.mrf.mxu1 }
 0x108   :  { %375 = vst [vmem:[#allocation8 + $0x30] sm:$0xff] %v359_v34  ;;  %383 = vst [vmem:[#allocation8 + $0x70] sm:$0xff] %v367_v35  ;;  %v357_v38 = vmax.f32 %v255_v36, 0.0  ;;  %v365_v39 = vmax.f32 %v287_v37, 0.0 }
 0x109   :  { %v458_v40 = vpop.f32.mrf.mxu0  ;;  %v466_v41 = vpop.f32.mrf.mxu1 }
 0x10a   :  { %373 = vst [vmem:[#allocation8 + $0x20] sm:$0xff] %v357_v38  ;;  %381 = vst [vmem:[#allocation8 + $0x60] sm:$0xff] %v365_v39  ;;  %v360_v42 = vmax.f32 %v458_v40, 0.0  ;;  %v368_v43 = vmax.f32 %v466_v41, 0.0 }
 0x10b   :  { %v258_v44 = vpop.f32.mrf.mxu0  ;;  %v290_v45 = vpop.f32.mrf.mxu1 }
 0x10c   :  { %376 = vst [vmem:[#allocation8 + $0x38] sm:$0xff] %v360_v42  ;;  %384 = vst [vmem:[#allocation8 + $0x78] sm:$0xff] %v368_v43  ;;  %v358_v46 = vmax.f32 %v258_v44, 0.0  ;;  %v366_v47 = vmax.f32 %v290_v45, 0.0 }
 0x10e   :  { %374 = vst [vmem:[#allocation8 + $0x28] sm:$0xff] %v358_v46  ;;  %382 = vst [vmem:[#allocation8 + $0x68] sm:$0xff] %v366_v47 }
 0x10f   :  { %557 = shalt.err (!%p554_p0)
}
 0x110   :  { %s577_s22 = smov 128   ;;  %s578_s23 = smov 8  }
 0x111   :  { %396 = dma.vmem_to_hbm [thread:$0]  %s391_s1, 2048, %s605_s2, [#allocation5], %s577_s22, %s577_s22, %s578_s23  }
 0x112   :  { %570 = dma.done.wait [#allocation5], 2048  }
 0x113   :  { %571 = vsyncadd [#allocation5], 4294965248 }
 0x114   :  { %400 = vsyncpa [#allocation4], 1 }
 0x115   :  { %401 = vsyncpa [#allocation7], 1 }
 0x116   :  { %402 = vsyncpa [#allocation5], 1 }

</bundles_post_ra>
